<compile_context>
chip_gen: v7x
topology: tpu7x:2x2x1
jax: 0.10.0
libtpu: 0.0.40
codegen_flags: <defaults>
</compile_context>

<pallas_src>
import functools

import jax
import jax.numpy as jnp
from jax.experimental import pallas as pl
from jax.experimental.pallas import tpu as pltpu


def _round_up(x, m):
    return ((x + m - 1) // m) * m


def _lane_pad(d):
    return _round_up(d, 128)


def decoder_kernel(z_ref, w1_ref, b1_ref, w2_ref, b2_ref, w3_ref, b3_ref, o_ref):
    # Layer 1: f32 z tile cast to bf16 in-kernel; bf16 x bf16 -> f32 on the MXU.
    h1 = jnp.dot(z_ref[...].astype(jnp.bfloat16), w1_ref[...],
                 preferred_element_type=jnp.float32)
    h1 = jnp.maximum(h1 + b1_ref[...], 0.0)           # bias + ReLU in f32 (v5e-safe)

    # Layer 2: (TM, 64) @ (64, 128)
    h2 = jnp.dot(h1.astype(jnp.bfloat16), w2_ref[...],
                 preferred_element_type=jnp.float32)
    h2 = jnp.maximum(h2 + b2_ref[...], 0.0)

    # Output layer: (TM, 128) @ (128, out_dim)
    out = jnp.dot(h2.astype(jnp.bfloat16), w3_ref[...],
                  preferred_element_type=jnp.float32)
    o_ref[...] = (out + b3_ref[...]).astype(o_ref.dtype)


def _pick_tile(B, tm):
    """Largest batch tile (amortize per-step overhead) while keeping the grid
    length >= 2 when B allows it, so v7x's two TensorCores both get work."""
    tm = max(8, _round_up(tm, 8))
    if B <= 8:
        return B                     # single block == full array dim (layout-legal)
    return min(tm, _round_up(pl.cdiv(B, 2), 8))


@functools.partial(jax.jit, static_argnames=("tm",))
def decoder_forward(z, params, *, tm=8192):
    """z: (B, latent_dim) float32. params from init_params (bf16 weights, f32 biases)."""
    w1, b1, w2, b2, w3, b3 = (params[k] for k in ("w1", "b1", "w2", "b2", "w3", "b3"))
    B, latent = z.shape
    h1_dim, h2_dim, out_dim = w1.shape[1], w2.shape[1], w3.shape[1]

    tm_eff = _pick_tile(B, tm)
    grid = (pl.cdiv(B, tm_eff),)     # no pad/slice passes: partial last block masked

    # VMEM budget (last dims lane-pad to 128 in VMEM):
    #   double-buffered f32 z / out tiles, resident bf16 weights + f32 biases,
    #   f32 intermediates (h1/h2/out) and their bf16 casts, plus headroom.
    tile_in = 2 * tm_eff * _lane_pad(latent) * 4
    tile_out = 2 * tm_eff * _lane_pad(out_dim) * 4
    weights = 2 * (_round_up(latent, 16) * _lane_pad(h1_dim)
                   + _round_up(h1_dim, 16) * _lane_pad(h2_dim)
                   + _round_up(h2_dim, 16) * _lane_pad(out_dim))
    biases = 3 * 8 * 128 * 4
    interm = (tm_eff * (_lane_pad(h1_dim) + _lane_pad(h2_dim) + _lane_pad(out_dim)) * 4
              + tm_eff * (_lane_pad(latent) + _lane_pad(h1_dim) + _lane_pad(h2_dim)) * 2)
    vmem_limit = int(min(tile_in + tile_out + weights + biases + interm + (8 << 20),
                         56 << 20))  # stay under v7x's 64 MiB physical VMEM per TC

    # Resident operands: constant block index -> DMA'd once, stay in VMEM.
    resident = lambda shape: pl.BlockSpec(shape, lambda i: (0,) * len(shape))

    return pl.pallas_call(
        decoder_kernel,
        out_shape=jax.ShapeDtypeStruct((B, out_dim), jnp.float32),
        grid=grid,
        in_specs=[
            pl.BlockSpec((tm_eff, latent), lambda i: (i, 0)),   # streamed batch tile
            resident(w1.shape), resident(b1.shape),
            resident(w2.shape), resident(b2.shape),
            resident(w3.shape), resident(b3.shape),
        ],
        out_specs=pl.BlockSpec((tm_eff, out_dim), lambda i: (i, 0)),
        compiler_params=pltpu.CompilerParams(
            dimension_semantics=("parallel",),   # megacore-shard the batch axis (v7x)
            vmem_limit_bytes=vmem_limit,
        ),
    )(z, w1, b1, w2, b2, w3, b3)


def init_params(key, latent_dim, output_dim):
    """nn.Linear-equivalent init; weights stored as (in, out) and converted to
    bf16 ONCE here (no per-forward-call conversions). Biases stay f32 as (1, d)."""
    dims = [(latent_dim, 64), (64, 128), (128, output_dim)]
    params = {}
    for i, (d_in, d_out) in enumerate(dims, start=1):
        key, kw, kb = jax.random.split(key, 3)
        bound = 1.0 / jnp.sqrt(jnp.float32(d_in))
        w = jax.random.uniform(kw, (d_in, d_out), jnp.float32, minval=-bound, maxval=bound)
        params[f"w{i}"] = w.astype(jnp.bfloat16)
        params[f"b{i}"] = jax.random.uniform(
            kb, (1, d_out), jnp.float32, minval=-bound, maxval=bound)
    return params


def decoder_reference_bf16(z, params):
    # Same bf16-rounded operands / f32 accumulation as the kernel.
    f32 = jnp.float32
    w = lambda k: params[k].astype(f32)                 # stored bf16 weights, upcast
    r = lambda x: x.astype(jnp.bfloat16).astype(f32)    # round activations like kernel
    h1 = jnp.maximum(jnp.dot(r(z), w("w1")) + params["b1"], 0.0)
    h2 = jnp.maximum(jnp.dot(r(h1), w("w2")) + params["b2"], 0.0)
    return jnp.dot(r(h2), w("w3")) + params["b3"]


def decoder_reference_f32(z, params):
    # PyTorch-equivalent f32 forward using the (bf16-stored) weights upcast to f32.
    f32 = jnp.float32
    h1 = jnp.maximum(z @ params["w1"].astype(f32) + params["b1"], 0.0)
    h2 = jnp.maximum(h1 @ params["w2"].astype(f32) + params["b2"], 0.0)
    return h2 @ params["w3"].astype(f32) + params["b3"]


if __name__ == "__main__":
    latent_dim, output_dim, batch = 16, 32, 8

    key = jax.random.PRNGKey(0)
    key, kz = jax.random.split(key)
    z = jax.random.normal(kz, (batch, latent_dim), jnp.float32)
    params = init_params(key, latent_dim, output_dim)

    out = jax.block_until_ready(decoder_forward(z, params))

    assert out.shape == (batch, output_dim)
    # Tight check vs. a reference using the same bf16-rounded matmul operands.
    ref_bf16 = decoder_reference_bf16(z, params)
    assert jnp.allclose(out, ref_bf16, atol=2e-3, rtol=2e-3), \
        float(jnp.max(jnp.abs(out - ref_bf16)))
    # Loose sanity check vs. the f32 (PyTorch-equivalent) forward.
    ref_f32 = decoder_reference_f32(z, params)
    assert jnp.allclose(out, ref_f32, atol=5e-2, rtol=5e-2), \
        float(jnp.max(jnp.abs(out - ref_f32)))

    print("KERNEL_OK")
</pallas_src>

<mosaic_0001>
module attributes {stable_mosaic.version = 11 : i64} {
  func.func @decoder_kernel(%arg0: i32, %arg1: memref<8x16xf32, #tpu.memory_space<vmem>>, %arg2: memref<16x64xbf16, #tpu.memory_space<vmem>>, %arg3: memref<1x64xf32, #tpu.memory_space<vmem>>, %arg4: memref<64x128xbf16, #tpu.memory_space<vmem>>, %arg5: memref<1x128xf32, #tpu.memory_space<vmem>>, %arg6: memref<128x32xbf16, #tpu.memory_space<vmem>>, %arg7: memref<1x32xf32, #tpu.memory_space<vmem>>, %arg8: memref<8x32xf32, #tpu.memory_space<vmem>>) attributes {dimension_semantics = [#tpu.dimension_semantics<parallel>], iteration_bounds = array<i64: 1>, scalar_prefetch = 0 : i64, scratch_operands = 0 : i64, tpu.core_type = #tpu.core_type<tc>, window_params = [{transform_indices = @transform_0, window_bounds = array<i64: 8, 16>}, {pipeline_mode = #tpu.pipeline_mode<synchronous>, transform_indices = @transform_1, window_bounds = array<i64: 16, 64>}, {pipeline_mode = #tpu.pipeline_mode<synchronous>, transform_indices = @transform_2, window_bounds = array<i64: 1, 64>}, {pipeline_mode = #tpu.pipeline_mode<synchronous>, transform_indices = @transform_3, window_bounds = array<i64: 64, 128>}, {pipeline_mode = #tpu.pipeline_mode<synchronous>, transform_indices = @transform_4, window_bounds = array<i64: 1, 128>}, {pipeline_mode = #tpu.pipeline_mode<synchronous>, transform_indices = @transform_5, window_bounds = array<i64: 128, 32>}, {pipeline_mode = #tpu.pipeline_mode<synchronous>, transform_indices = @transform_6, window_bounds = array<i64: 1, 32>}, {transform_indices = @transform_7, window_bounds = array<i64: 8, 32>}]} {
    %c0 = arith.constant 0 : index
    %c0_0 = arith.constant 0 : index
    %0 = vector.load %arg1[%c0, %c0_0] : memref<8x16xf32, #tpu.memory_space<vmem>>, vector<8x16xf32>
    %1 = arith.truncf %0 : vector<8x16xf32> to vector<8x16xbf16>
    %c0_1 = arith.constant 0 : index
    %c0_2 = arith.constant 0 : index
    %2 = vector.load %arg2[%c0_1, %c0_2] : memref<16x64xbf16, #tpu.memory_space<vmem>>, vector<16x64xbf16>
    %cst = arith.constant dense<0.000000e+00> : vector<8x64xf32>
    %3 = tpu.matmul %1, %2, %cst {dimension_numbers = #tpu.dot_dimension_numbers<[1], [0], [0], [1], [0, 0, 1, 1], [], []>} : vector<8x16xbf16>, vector<16x64xbf16>, vector<8x64xf32> -> vector<8x64xf32>
    %c0_3 = arith.constant 0 : index
    %c0_4 = arith.constant 0 : index
    %4 = vector.load %arg3[%c0_3, %c0_4] : memref<1x64xf32, #tpu.memory_space<vmem>>, vector<1x64xf32>
    %5 = vector.broadcast %4 : vector<1x64xf32> to vector<8x64xf32>
    %6 = arith.addf %3, %5 : vector<8x64xf32>
    %cst_5 = arith.constant 0.000000e+00 : f32
    %7 = vector.broadcast %cst_5 : f32 to vector<8x64xf32>
    %8 = arith.maximumf %6, %7 : vector<8x64xf32>
    %9 = arith.truncf %8 : vector<8x64xf32> to vector<8x64xbf16>
    %c0_6 = arith.constant 0 : index
    %c0_7 = arith.constant 0 : index
    %10 = vector.load %arg4[%c0_6, %c0_7] : memref<64x128xbf16, #tpu.memory_space<vmem>>, vector<64x128xbf16>
    %cst_8 = arith.constant dense<0.000000e+00> : vector<8x128xf32>
    %11 = tpu.matmul %9, %10, %cst_8 {dimension_numbers = #tpu.dot_dimension_numbers<[1], [0], [0], [1], [0, 0, 1, 1], [], []>} : vector<8x64xbf16>, vector<64x128xbf16>, vector<8x128xf32> -> vector<8x128xf32>
    %c0_9 = arith.constant 0 : index
    %c0_10 = arith.constant 0 : index
    %12 = vector.load %arg5[%c0_9, %c0_10] : memref<1x128xf32, #tpu.memory_space<vmem>>, vector<1x128xf32>
    %13 = vector.broadcast %12 : vector<1x128xf32> to vector<8x128xf32>
    %14 = arith.addf %11, %13 : vector<8x128xf32>
    %cst_11 = arith.constant 0.000000e+00 : f32
    %15 = vector.broadcast %cst_11 : f32 to vector<8x128xf32>
    %16 = arith.maximumf %14, %15 : vector<8x128xf32>
    %17 = arith.truncf %16 : vector<8x128xf32> to vector<8x128xbf16>
    %c0_12 = arith.constant 0 : index
    %c0_13 = arith.constant 0 : index
    %18 = vector.load %arg6[%c0_12, %c0_13] : memref<128x32xbf16, #tpu.memory_space<vmem>>, vector<128x32xbf16>
    %cst_14 = arith.constant dense<0.000000e+00> : vector<8x32xf32>
    %19 = tpu.matmul %17, %18, %cst_14 {dimension_numbers = #tpu.dot_dimension_numbers<[1], [0], [0], [1], [0, 0, 1, 1], [], []>} : vector<8x128xbf16>, vector<128x32xbf16>, vector<8x32xf32> -> vector<8x32xf32>
    %c0_15 = arith.constant 0 : index
    %c0_16 = arith.constant 0 : index
    %20 = vector.load %arg7[%c0_15, %c0_16] : memref<1x32xf32, #tpu.memory_space<vmem>>, vector<1x32xf32>
    %21 = vector.broadcast %20 : vector<1x32xf32> to vector<8x32xf32>
    %22 = arith.addf %19, %21 : vector<8x32xf32>
    %c0_17 = arith.constant 0 : index
    %c0_18 = arith.constant 0 : index
    %23 = vector.load %arg8[%c0_17, %c0_18] : memref<8x32xf32, #tpu.memory_space<vmem>>, vector<8x32xf32>
    tpu.vector_store %arg8[%c0_17, %c0_18], %22 {strides = array<i32>} : memref<8x32xf32, #tpu.memory_space<vmem>>, vector<8x32xf32>,
    return
  }
  func.func @transform_0(%arg0: i32) -> (i32, i32) {
    %c0_i32 = arith.constant 0 : i32
    %c0_i32_0 = arith.constant 0 : i32
    return %arg0, %c0_i32 : i32, i32
  }
  func.func @transform_1(%arg0: i32) -> (i32, i32) {
    %c0_i32 = arith.constant 0 : i32
    %c0_i32_0 = arith.constant 0 : i32
    %c0_i32_1 = arith.constant 0 : i32
    return %c0_i32, %c0_i32_0 : i32, i32
  }
  func.func @transform_2(%arg0: i32) -> (i32, i32) {
    %c0_i32 = arith.constant 0 : i32
    %c0_i32_0 = arith.constant 0 : i32
    %c0_i32_1 = arith.constant 0 : i32
    return %c0_i32, %c0_i32_0 : i32, i32
  }
  func.func @transform_3(%arg0: i32) -> (i32, i32) {
    %c0_i32 = arith.constant 0 : i32
    %c0_i32_0 = arith.constant 0 : i32
    %c0_i32_1 = arith.constant 0 : i32
    return %c0_i32, %c0_i32_0 : i32, i32
  }
  func.func @transform_4(%arg0: i32) -> (i32, i32) {
    %c0_i32 = arith.constant 0 : i32
    %c0_i32_0 = arith.constant 0 : i32
    %c0_i32_1 = arith.constant 0 : i32
    return %c0_i32, %c0_i32_0 : i32, i32
  }
  func.func @transform_5(%arg0: i32) -> (i32, i32) {
    %c0_i32 = arith.constant 0 : i32
    %c0_i32_0 = arith.constant 0 : i32
    %c0_i32_1 = arith.constant 0 : i32
    return %c0_i32, %c0_i32_0 : i32, i32
  }
  func.func @transform_6(%arg0: i32) -> (i32, i32) {
    %c0_i32 = arith.constant 0 : i32
    %c0_i32_0 = arith.constant 0 : i32
    %c0_i32_1 = arith.constant 0 : i32
    return %c0_i32, %c0_i32_0 : i32, i32
  }
  func.func @transform_7(%arg0: i32) -> (i32, i32) {
    %c0_i32 = arith.constant 0 : i32
    %c0_i32_0 = arith.constant 0 : i32
    return %arg0, %c0_i32 : i32, i32
  }
}

</mosaic_0001>

<bundles_post_ra>
// kernel: decoder_forward.1
= control target key start
LH: loop header
LB: loop body
LE: loop exit
PB: predicated region body
PF: predicated region fallthrough
CT: control target
= control target key end

     0   :  { %v415_v1 = vmov 0.0   ;;  %vm45_vm0 = vcmask 130048   ;;  %vm416_vm1 = vmmov 0   ;;  %s521_s0 = inlined_call_operand.vmem [shape: f32[8,16], index: 0, kind: input, shape index: {}]   ;;  %s522_s1 = inlined_call_operand.vmem [shape: bf16[16,64], index: 1, kind: input, shape index: {}]   ;;  %s523_s2 = inlined_call_operand.vmem [shape: f32[1,64], index: 2, kind: input, shape index: {}]   ;;  %s524_s3 = inlined_call_operand.vmem [shape: bf16[64,128], index: 3, kind: input, shape index: {}]   ;;  %s525_s4 = inlined_call_operand.vmem [shape: f32[1,128], index: 4, kind: input, shape index: {}]   ;;  %s526_s5 = inlined_call_operand.vmem [shape: bf16[128,32], index: 5, kind: input, shape index: {}]   ;;  %s527_s6 = inlined_call_operand.vmem [shape: f32[1,32], index: 6, kind: input, shape index: {}]   ;;  %s528_s7 = inlined_call_operand.hbm [shape: f32[8,32], index: 7, kind: output, shape index: {}]  }
   0x1   :  { %v378_v0 = vld [vmem:[%s522_s1] sm:$0xff]   ;;  %337 = vmatprep.subr.bf16.mxu1 %v415_v1  ;;  %355 = vmatprep.subr.bf16.mxu0 %v415_v1  ;;  %v380_v5 = vld [vmem:[%s524_s3 + $0x8] sm:$0xff]  }
   0x2   :  { %v28_v2 = vld [vmem:[%s521_s0] sm:$0xff]  ;;  %338 = vmatpush3.bf16.msra.mxu1 %v378_v0  ;;  %339 = vmatprep.mubr.msk.bf16.mxu1 %vm416_vm1, %v415_v1 }
   0x3   :  { %v379_v3 = vld [vmem:[%s524_s3] sm:$0xff]   ;;  %v29_v4 = vpack.c.bf16 %v28_v2, %v28_v2  ;;  %343 = vmatprep.subr.bf16.mxu1 %v415_v1  ;;  %371 = vmatprep.mubr.msk.bf16.mxu0 %vm416_vm1, %v415_v1 }
   0x5   :  { %340 = vmatmul.mubr.msk.bf16.vlgmr.msra.gmra.mrb[0].mxu1 %vm45_vm0, %v29_v4 }
   0x6   :  { %344 = vmatpush3.bf16.msra.mxu1 %v379_v3  ;;  %351 = vmatprep.mubr.msk.bf16.mxu1 %vm416_vm1, %v415_v1 }
   0x7   :  { %345 = vmatprep.subr.bf16.mxu1 %v415_v1 }
   0xa   :  { %346 = vmatpush3.bf16.msra.mxu1 %v380_v5 }
   0xb   :  { %12 = vsyncpa [#allocation3], 0  ;;  %347 = vmatprep.subr.bf16.mxu1 %v415_v1  ;;  %v381_v6 = vld [vmem:[%s524_s3 + $0x10] sm:$0xff]   ;;  %v382_v7 = vld [vmem:[%s524_s3 + $0x18] sm:$0xff]   ;;  %vm130_vm2 = vcmask 523264   ;;  %s417_s1 = smov [#allocation2]  }
   0xc   :  { %v383_v8 = vld [vmem:[%s526_s5] sm:$0xff]   ;;  %v384_v9 = vld [vmem:[%s526_s5 + $0x8] sm:$0xff]   ;;  %v385_v10 = vld [vmem:[%s526_s5 + $0x10] sm:$0xff]   ;;  %s295_s0 = sshll.u32 %s417_s1, 4  ;;  %vm287_vm3 = vcmask 261120   ;;  %s296_s0 = int_to_ptr.vmem [resolvable:$true] %s295_s0 }
   0xd   :  { %356 = vmatpush3.bf16.msra.mxu0 %v383_v8  ;;  %v386_v11 = vld [vmem:[%s526_s5 + $0x18] sm:$0xff]   ;;  %v387_v12 = vld [vmem:[%s526_s5 + $0x20] sm:$0xff]   ;;  %v388_v13 = vld [vmem:[%s526_s5 + $0x28] sm:$0xff]   ;;  %p396_p1 = scmp.lt.s32.totalorder %s296_s0, %s296_s0 }
   0xe   :  { %348 = vmatpush3.bf16.msra.mxu1 %v381_v6  ;;  %357 = vmatprep.subr.bf16.mxu0 %v415_v1  ;;  %v303_v14 = vld [vmem:[%s523_s2] ss:$0 sm:$0xff]  ;;  %v389_v22 = vld [vmem:[%s526_s5 + $0x30] sm:$0xff]   ;;  %v390_v23 = vld [vmem:[%s526_s5 + $0x38] sm:$0xff]  }
   0xf   :  { %349 = vmatprep.subr.bf16.mxu1 %v415_v1  ;;  %v306_v24 = vld [vmem:[%s525_s4] ss:$0 sm:$0xff]  ;;  %s391_s4 = scalar_lea.vmem %s296_s0, 128 }
  0x10   :  { %v312_v32 = vld [vmem:[%s527_s6] ss:$0 sm:$0xff]  ;;  %p392_p0 = scmp.ne.s32.totalorder %s296_s0, %s391_s4  ;;  %p397_p2 = scmp.lt.s32.totalorder %s391_s4, %s391_s4 }
  0x11   :  { %358 = vmatpush3.bf16.msra.mxu0 %v384_v9 }
  0x12   :  { %350 = vmatpush3.bf16.msra.mxu1 %v382_v7  ;;  %359 = vmatprep.subr.bf16.mxu0 %v415_v1  ;;  %p398_p3 = por %p397_p2, %p396_p1 }
  0x14   :  { %p399_p4 = pnand %p398_p3, %p392_p0 }
  0x15   :  { %360 = vmatpush3.bf16.msra.mxu0 %v385_v10 }
  0x16   :  { %361 = vmatprep.subr.bf16.mxu0 %v415_v1 }
  0x19   :  { %362 = vmatpush3.bf16.msra.mxu0 %v386_v11 }
  0x1a   :  { %363 = vmatprep.subr.bf16.mxu0 %v415_v1 }
  0x1d   :  { %364 = vmatpush3.bf16.msra.mxu0 %v387_v12 }
  0x1e   :  { %365 = vmatprep.subr.bf16.mxu0 %v415_v1 }
  0x21   :  { %366 = vmatpush3.bf16.msra.mxu0 %v388_v13 }
  0x22   :  { %367 = vmatprep.subr.bf16.mxu0 %v415_v1 }
  0x25   :  { %368 = vmatpush3.bf16.msra.mxu0 %v389_v22 }
  0x26   :  { %369 = vmatprep.subr.bf16.mxu0 %v415_v1 }
  0x29   :  { %370 = vmatpush3.bf16.msra.mxu0 %v390_v23 }
  0xd8   :  { %v83_v15 = vpop.f32.mrb[0].mxu1 }
  0xd9   :  { %v84_v16 = vadd.f32 %v303_v14, %v83_v15  ;;  %v341_v17 = vpop.f32.mrb[1].mxu1 }
  0xda   :  { %v86_v18 = vpop.f32.mrb[2].mxu1 }
  0xdb   :  { %v89_v19 = vmax.f32 %v84_v16, 0.0  ;;  %v342_v20 = vpop.f32.mrb[3].mxu1 }
  0xdd   :  { %v90_v21 = vpack.c.bf16 %v89_v19, %v89_v19 }
  0xdf   :  { %352 = vmatmul.mubr.msk.bf16.vlgmr.msra.gmra.mrb[4].mxu1 %vm130_vm2, %v90_v21 }
 0x1b2   :  { %v168_v25 = vpop.f32.mrb[4].mxu1 }
 0x1b3   :  { %v169_v26 = vadd.f32 %v306_v24, %v168_v25  ;;  %v353_v27 = vpop.f32.mrb[5].mxu1 }
 0x1b4   :  { %v171_v28 = vpop.f32.mrb[6].mxu1 }
 0x1b5   :  { %v174_v29 = vmax.f32 %v169_v26, 0.0  ;;  %v354_v30 = vpop.f32.mrb[7].mxu1 }
 0x1b7   :  { %v175_v31 = vpack.c.bf16 %v174_v29, %v174_v29 }
 0x1b9   :  { %372 = vmatmul.mubr.bf16.vlgmr.msra.gmra.mrb[0].mxu0 %v175_v31 }
 0x28c   :  { %v281_v33 = vpop.f32.mrb[0].mxu0 }
 0x28d   :  { %v282_v34 = vadd.f32 %v312_v32, %v281_v33  ;;  %v373_v35 = vpop.f32.mrb[1].mxu0 }
 0x28e   :  { %v284_v36 = vpop.f32.mrb[2].mxu0 }
 0x28f   :  { %v374_v37 = vpop.f32.mrb[3].mxu0  ;;  %288 = vst.msk [vmem:[#allocation2] sm:$0xff] %vm287_vm3, %v282_v34 }
 0x290   :  { %402 = shalt.err (!%p399_p4)
}
 0x291   :  { %s403_s6 = scalar_lea.hbm %s528_s7, 128 }
 0x292   :  { %p404_p5 = scmp.ne.s32.totalorder %s528_s7, %s403_s6  ;;  %p407_p6 = scmp.lt.u32.totalorder %s403_s6, %s528_s7 }
 0x294   :  { %p409_p7 = pnand %p407_p6, %p404_p5 }
 0x296   :  { %412 = shalt.err (!%p409_p7)
}
 0x297   :  { %298 = dma.vmem_to_hbm [thread:$0]  %s296_s0, 128, %s528_s7, [#allocation3]  }
 0x298   :  { %413 = dma.done.wait [#allocation3], 128  }
 0x299   :  { %414 = vsyncadd [#allocation3], 4294967168 }
 0x29a   :  { %302 = vsyncpa [#allocation3], 1 }

</bundles_post_ra>
